<compile_context>
chip_gen: v5e
topology: v5e:2x2
jax: 0.10.0
libtpu: 0.0.40
codegen_flags: <defaults>
</compile_context>

<pallas_src>
import functools
import math

import jax
import jax.numpy as jnp
from jax import lax
from jax.experimental import pallas as pl
from jax.experimental.pallas import tpu as pltpu

_INV_SQRT2 = 1.0 / math.sqrt(2.0)
_LANE = 128


def _round_up(a, b):
    return ((a + b - 1) // b) * b


def _sublane_for(dtype):
    isz = jnp.dtype(dtype).itemsize
    if isz >= 4:
        return 8
    if isz == 2:
        return 16
    return 32


def _vmem_capacity_bytes():
    try:
        cap = getattr(pltpu.get_tpu_info(), "vmem_capacity_bytes", None)
        if cap:
            return int(cap)
    except Exception:
        pass
    return 64 * 1024 * 1024  # conservative fallback (v7x-sized VMEM/TC)


def _gelu_exact(h):
    # Exact erf-based GELU in f32 (matches PyTorch reference bit-for-bit math).
    return h * 0.5 * (1.0 + lax.erf(h * _INV_SQRT2))


# --------------------------------------------------------------------------- #
# Kernels
# --------------------------------------------------------------------------- #
def _ffn_kernel_resident(x_ref, w1_ref, b1_ref, w2_ref, b2_ref, o_ref, *, mxu_dtype):
    """Weights fully VMEM-resident; single (parallel) M grid axis."""
    x = x_ref[...]
    w1 = w1_ref[...]
    w2 = w2_ref[...]
    if mxu_dtype is not None:
        x, w1, w2 = x.astype(mxu_dtype), w1.astype(mxu_dtype), w2.astype(mxu_dtype)

    h = jnp.dot(x, w1, preferred_element_type=jnp.float32)
    h = h + b1_ref[...].astype(jnp.float32)
    h = _gelu_exact(h)
    y = jnp.dot(h.astype(w2.dtype), w2, preferred_element_type=jnp.float32)
    o_ref[...] = (y + b2_ref[...].astype(jnp.float32)).astype(o_ref.dtype)


def _ffn_kernel_reduce(x_ref, w1_ref, b1_ref, w2_ref, b2_ref, o_ref, acc_ref, *, mxu_dtype):
    """F-chunked reduction path: acc scratch resident across the F axis."""
    f = pl.program_id(1)

    @pl.when(f == 0)
    def _():
        acc_ref[...] = jnp.zeros_like(acc_ref)

    x = x_ref[...]
    w1 = w1_ref[...]
    w2 = w2_ref[...]
    if mxu_dtype is not None:
        x, w1, w2 = x.astype(mxu_dtype), w1.astype(mxu_dtype), w2.astype(mxu_dtype)

    h = jnp.dot(x, w1, preferred_element_type=jnp.float32)
    h = h + b1_ref[...].astype(jnp.float32)
    h = _gelu_exact(h)
    acc_ref[...] += jnp.dot(h.astype(w2.dtype), w2, preferred_element_type=jnp.float32)

    @pl.when(f == pl.num_programs(1) - 1)
    def _():
        o_ref[...] = (acc_ref[...] + b2_ref[...].astype(jnp.float32)).astype(o_ref.dtype)


# --------------------------------------------------------------------------- #
# Planning
# --------------------------------------------------------------------------- #
def _plan(m, hp, fp, x_itemsize, w_itemsize, sublane, budget, force_reduction):
    """Pick (tm, tf, resident) under the VMEM budget. Prefer resident weights,
    then the largest tm (weight-reuse arithmetic intensity), shrinking tf first."""
    tm_cap = _round_up(min(m, 1024), sublane)
    if m >= 2 * sublane:  # keep >= 2 M tiles so v7x megacore has work for both TCs
        tm_cap = min(tm_cap, _round_up((m + 1) // 2, sublane))
    cands = sorted(
        {t for t in (tm_cap, 1024, 768, 512, 384, 256, 192, 128, 96, 64, 32, 16, 8)
         if t % sublane == 0 and sublane <= t <= tm_cap},
        reverse=True,
    ) or [sublane]

    def vmem_resident(tm):
        return (4 * tm * hp * x_itemsize                  # x + out (double-buffered)
                + 4 * hp * fp * w_itemsize                # W1 + W2 (budget 2x, worst case)
                + 2 * (fp + hp) * 4                       # biases
                + tm * fp * (4 + w_itemsize)              # gelu intermediate (f32 + cast)
                + tm * hp * 4)                            # fc2 result before bias/cast

    def vmem_reduce(tm, tf):
        return (4 * tm * hp * x_itemsize                  # x + out (double-buffered)
                + 4 * hp * tf * w_itemsize                # W1 + W2 chunks (double-buffered)
                + 2 * (tf + hp) * 4                       # bias chunks
                + tm * hp * 4                             # f32 accumulator scratch
                + tm * tf * (4 + w_itemsize)              # gelu intermediate
                + tm * hp * 4)                            # partial product

    if not force_reduction:
        for tm in cands:
            if vmem_resident(tm) <= budget:
                return tm, fp, True

    tf_cands = sorted(
        {d for d in range(_LANE, min(fp, 2048) + _LANE, _LANE) if fp % d == 0},
        reverse=True,
    )
    for tm in cands:
        for tf in tf_cands:
            if vmem_reduce(tm, tf) <= budget:
                return tm, tf, False
    return cands[-1], tf_cands[-1], False


# --------------------------------------------------------------------------- #
# Host-side API
# --------------------------------------------------------------------------- #
def prepare_ffn_params(w1, b1, w2, b2, *, weight_dtype=None):
    """Pad (and optionally cast) FFN parameters ONCE at init time."""
    hidden, ff = w1.shape
    hp = _round_up(hidden, _LANE)
    fp = _round_up(ff, _LANE)
    if weight_dtype is not None:
        w1, b1, w2, b2 = (a.astype(weight_dtype) for a in (w1, b1, w2, b2))
    w1p = jnp.pad(w1, ((0, hp - hidden), (0, fp - ff)))
    b1p = jnp.pad(b1, (0, fp - ff)).reshape(1, fp)
    w2p = jnp.pad(w2, ((0, fp - ff), (0, hp - hidden)))
    b2p = jnp.pad(b2, (0, hp - hidden)).reshape(1, hp)
    return dict(w1=w1p, b1=b1p, w2=w2p, b2=b2p, hidden=hidden, ff=ff)


def ffn_apply(params, x, *, tm=None, tf=None, force_reduction=False, mxu_dtype=None):
    """x: (batch, seq, hidden) -> (batch, seq, hidden)."""
    hidden, ff = params["hidden"], params["ff"]
    w1p, b1p, w2p, b2p = params["w1"], params["b1"], params["w2"], params["b2"]
    batch, seq, xh = x.shape
    assert xh == hidden
    hp, fp = w1p.shape
    m = batch * seq

    xi = jnp.dtype(x.dtype).itemsize
    wi = jnp.dtype(w1p.dtype).itemsize
    sublane = _sublane_for(x.dtype)

    cap = _vmem_capacity_bytes()
    # ~100 MiB on v5e/v6e (128 MiB physical), ~51 MiB on v7x (64 MiB physical).
    vmem_limit = min(int(cap * 0.8), 100 * 1024 * 1024)
    budget = int(vmem_limit * 0.9)  # headroom for Mosaic internal scratch

    auto_tm, auto_tf, resident = _plan(m, hp, fp, xi, wi, sublane, budget, force_reduction)
    tm = auto_tm if tm is None else tm
    tf = fp if resident else (auto_tf if tf is None else tf)
    assert tm % sublane == 0, (tm, sublane)
    assert tf % _LANE == 0 and fp % tf == 0, (tf, fp)

    mp = _round_up(m, tm)
    n_mtiles = mp // tm
    x2d = jnp.pad(x.reshape(m, hidden), ((0, mp - m), (0, hp - hidden)))

    # Honest scheduling hint: weights are DMA'd once (resident) or once per M tile.
    weight_bytes = 2 * hp * fp * wi * (1 if resident else n_mtiles)
    cost = pl.CostEstimate(
        flops=4 * mp * hp * fp,
        transcendentals=mp * fp,
        bytes_accessed=2 * mp * hp * xi + weight_bytes + (fp + hp) * wi,
    )
    compiler_params = pltpu.CompilerParams(
        dimension_semantics=("parallel",) if resident else ("parallel", "arbitrary"),
        vmem_limit_bytes=vmem_limit,
    )

    if resident:
        out2d = pl.pallas_call(
            functools.partial(_ffn_kernel_resident, mxu_dtype=mxu_dtype),
            out_shape=jax.ShapeDtypeStruct((mp, hp), x.dtype),
            grid_spec=pltpu.PrefetchScalarGridSpec(
                num_scalar_prefetch=0,
                grid=(n_mtiles,),
                in_specs=[
                    pl.BlockSpec((tm, hp), lambda i: (i, 0)),   # x streams over M
                    pl.BlockSpec((hp, fp), lambda i: (0, 0)),   # W1 resident (DMA'd once)
                    pl.BlockSpec((1, fp), lambda i: (0, 0)),    # b1 resident
                    pl.BlockSpec((fp, hp), lambda i: (0, 0)),   # W2 resident
                    pl.BlockSpec((1, hp), lambda i: (0, 0)),    # b2 resident
                ],
                out_specs=pl.BlockSpec((tm, hp), lambda i: (i, 0)),
            ),
            compiler_params=compiler_params,
            cost_estimate=cost,
        )(x2d, w1p, b1p, w2p, b2p)
    else:
        out2d = pl.pallas_call(
            functools.partial(_ffn_kernel_reduce, mxu_dtype=mxu_dtype),
            out_shape=jax.ShapeDtypeStruct((mp, hp), x.dtype),
            grid_spec=pltpu.PrefetchScalarGridSpec(
                num_scalar_prefetch=0,
                grid=(n_mtiles, fp // tf),                       # reduction axis F last
                in_specs=[
                    pl.BlockSpec((tm, hp), lambda i, f: (i, 0)),  # x tile (constant over F)
                    pl.BlockSpec((hp, tf), lambda i, f: (0, f)),  # W1 chunk
                    pl.BlockSpec((1, tf), lambda i, f: (0, f)),   # b1 chunk
                    pl.BlockSpec((tf, hp), lambda i, f: (f, 0)),  # W2 chunk
                    pl.BlockSpec((1, hp), lambda i, f: (0, 0)),   # b2 resident
                ],
                out_specs=pl.BlockSpec((tm, hp), lambda i, f: (i, 0)),  # constant over F
                scratch_shapes=[pltpu.VMEM((tm, hp), jnp.float32)],     # f32 accumulator
            ),
            compiler_params=compiler_params,
            cost_estimate=cost,
        )(x2d, w1p, b1p, w2p, b2p)

    return out2d[:m, :hidden].reshape(batch, seq, hidden)


def position_wise_feed_forward(x, w1, b1, w2, b2, **kwargs):
    """Convenience wrapper: prepare (pad) params + apply the kernel."""
    return ffn_apply(prepare_ffn_params(w1, b1, w2, b2), x, **kwargs)


def _ref_forward(x, w1, b1, w2, b2):
    """Pure-JAX reference of the PyTorch module."""
    h = jnp.einsum("bsh,hf->bsf", x, w1) + b1
    h = h * 0.5 * (1.0 + lax.erf(h * _INV_SQRT2))
    return jnp.einsum("bsf,fh->bsh", h, w2) + b2


def _make_params(key, hidden, ff, dtype=jnp.float32):
    kw1, kb1, kw2, kb2 = jax.random.split(key, 4)
    bound1 = 1.0 / math.sqrt(hidden)
    bound2 = 1.0 / math.sqrt(ff)
    w1 = jax.random.uniform(kw1, (hidden, ff), dtype, -bound1, bound1)
    b1 = jax.random.uniform(kb1, (ff,), dtype, -bound1, bound1)
    w2 = jax.random.uniform(kw2, (ff, hidden), dtype, -bound2, bound2)
    b2 = jax.random.uniform(kb2, (hidden,), dtype, -bound2, bound2)
    return w1, b1, w2, b2


if __name__ == "__main__":
    key = jax.random.PRNGKey(0)
    k1, k2, k3, k4 = jax.random.split(key, 4)

    # --- Test 1: module config (hidden_dim=32, feedforward_dim=64); auto plan
    # takes the VMEM-resident fast path with >=2 M tiles (megacore-friendly). ---
    batch, seq, hidden, ff = 2, 8, 32, 64
    x = jax.random.normal(k1, (batch, seq, hidden), dtype=jnp.float32)
    w1, b1, w2, b2 = _make_params(k2, hidden, ff)

    params = prepare_ffn_params(w1, b1, w2, b2)     # pad once, at init time
    out = jax.block_until_ready(ffn_apply(params, x))
    ref = _ref_forward(x, w1, b1, w2, b2)
    assert out.shape == (batch, seq, hidden)
    assert jnp.allclose(out, ref, atol=1e-4, rtol=1e-4), float(jnp.abs(out - ref).max())

    # --- Test 2: force the multi-F-step accumulator path with M/H/F padding
    # (m=21 not a multiple of tm, hidden=160 -> 256, ff=384 with tf=128). ---
    batch2, seq2, hidden2, ff2 = 3, 7, 160, 384
    x2 = jax.random.normal(k3, (batch2, seq2, hidden2), dtype=jnp.float32)
    w1b, b1b, w2b, b2b = _make_params(k4, hidden2, ff2)

    params2 = prepare_ffn_params(w1b, b1b, w2b, b2b)
    out2 = jax.block_until_ready(
        ffn_apply(params2, x2, tm=16, tf=128, force_reduction=True))
    ref2 = _ref_forward(x2, w1b, b1b, w2b, b2b)
    assert out2.shape == (batch2, seq2, hidden2)
    assert jnp.allclose(out2, ref2, atol=1e-4, rtol=1e-4), float(jnp.abs(out2 - ref2).max())

    print("KERNEL_OK")
</pallas_src>

<mosaic_0001>
module attributes {stable_mosaic.version = 11 : i64} {
  func.func @_ffn_kernel_resident(%arg0: i32, %arg1: memref<8x128xf32, #tpu.memory_space<vmem>>, %arg2: memref<128x128xf32, #tpu.memory_space<vmem>>, %arg3: memref<1x128xf32, #tpu.memory_space<vmem>>, %arg4: memref<128x128xf32, #tpu.memory_space<vmem>>, %arg5: memref<1x128xf32, #tpu.memory_space<vmem>>, %arg6: memref<8x128xf32, #tpu.memory_space<vmem>>) attributes {dimension_semantics = [#tpu.dimension_semantics<parallel>], iteration_bounds = array<i64: 2>, scalar_prefetch = 0 : i64, scratch_operands = 0 : i64, tpu.core_type = #tpu.core_type<tc>, window_params = [{transform_indices = @transform_0, window_bounds = array<i64: 8, 128>}, {pipeline_mode = #tpu.pipeline_mode<synchronous>, transform_indices = @transform_1, window_bounds = array<i64: 128, 128>}, {pipeline_mode = #tpu.pipeline_mode<synchronous>, transform_indices = @transform_2, window_bounds = array<i64: 1, 128>}, {pipeline_mode = #tpu.pipeline_mode<synchronous>, transform_indices = @transform_3, window_bounds = array<i64: 128, 128>}, {pipeline_mode = #tpu.pipeline_mode<synchronous>, transform_indices = @transform_4, window_bounds = array<i64: 1, 128>}, {transform_indices = @transform_5, window_bounds = array<i64: 8, 128>}]} {
    %c0 = arith.constant 0 : index
    %c0_0 = arith.constant 0 : index
    %0 = vector.load %arg1[%c0, %c0_0] : memref<8x128xf32, #tpu.memory_space<vmem>>, vector<8x128xf32>
    %c0_1 = arith.constant 0 : index
    %c0_2 = arith.constant 0 : index
    %1 = vector.load %arg2[%c0_1, %c0_2] : memref<128x128xf32, #tpu.memory_space<vmem>>, vector<128x128xf32>
    %c0_3 = arith.constant 0 : index
    %c0_4 = arith.constant 0 : index
    %2 = vector.load %arg4[%c0_3, %c0_4] : memref<128x128xf32, #tpu.memory_space<vmem>>, vector<128x128xf32>
    %cst = arith.constant dense<0.000000e+00> : vector<8x128xf32>
    %3 = tpu.matmul %0, %1, %cst {dimension_numbers = #tpu.dot_dimension_numbers<[1], [0], [0], [1], [0, 0, 1, 1], [], []>} : vector<8x128xf32>, vector<128x128xf32>, vector<8x128xf32> -> vector<8x128xf32>
    %c0_5 = arith.constant 0 : index
    %c0_6 = arith.constant 0 : index
    %4 = vector.load %arg3[%c0_5, %c0_6] : memref<1x128xf32, #tpu.memory_space<vmem>>, vector<1x128xf32>
    %5 = vector.broadcast %4 : vector<1x128xf32> to vector<8x128xf32>
    %6 = arith.addf %3, %5 : vector<8x128xf32>
    %cst_7 = arith.constant 5.000000e-01 : f32
    %7 = vector.broadcast %cst_7 : f32 to vector<8x128xf32>
    %8 = arith.mulf %6, %7 : vector<8x128xf32>
    %cst_8 = arith.constant 0.707106769 : f32
    %9 = vector.broadcast %cst_8 : f32 to vector<8x128xf32>
    %10 = arith.mulf %6, %9 : vector<8x128xf32>
    %11 = math.erf %10 : vector<8x128xf32>
    %cst_9 = arith.constant 1.000000e+00 : f32
    %12 = vector.broadcast %cst_9 : f32 to vector<8x128xf32>
    %13 = arith.addf %12, %11 : vector<8x128xf32>
    %14 = arith.mulf %8, %13 : vector<8x128xf32>
    %cst_10 = arith.constant dense<0.000000e+00> : vector<8x128xf32>
    %15 = tpu.matmul %14, %2, %cst_10 {dimension_numbers = #tpu.dot_dimension_numbers<[1], [0], [0], [1], [0, 0, 1, 1], [], []>} : vector<8x128xf32>, vector<128x128xf32>, vector<8x128xf32> -> vector<8x128xf32>
    %c0_11 = arith.constant 0 : index
    %c0_12 = arith.constant 0 : index
    %16 = vector.load %arg5[%c0_11, %c0_12] : memref<1x128xf32, #tpu.memory_space<vmem>>, vector<1x128xf32>
    %17 = vector.broadcast %16 : vector<1x128xf32> to vector<8x128xf32>
    %18 = arith.addf %15, %17 : vector<8x128xf32>
    %c0_13 = arith.constant 0 : index
    %c0_14 = arith.constant 0 : index
    %19 = vector.load %arg6[%c0_13, %c0_14] : memref<8x128xf32, #tpu.memory_space<vmem>>, vector<8x128xf32>
    tpu.vector_store %arg6[%c0_13, %c0_14], %18 {strides = array<i32>} : memref<8x128xf32, #tpu.memory_space<vmem>>, vector<8x128xf32>,
    return
  }
  func.func @transform_0(%arg0: i32) -> (i32, i32) {
    %c0_i32 = arith.constant 0 : i32
    %c0_i32_0 = arith.constant 0 : i32
    return %arg0, %c0_i32 : i32, i32
  }
  func.func @transform_1(%arg0: i32) -> (i32, i32) {
    %c0_i32 = arith.constant 0 : i32
    %c0_i32_0 = arith.constant 0 : i32
    %c0_i32_1 = arith.constant 0 : i32
    return %c0_i32, %c0_i32_0 : i32, i32
  }
  func.func @transform_2(%arg0: i32) -> (i32, i32) {
    %c0_i32 = arith.constant 0 : i32
    %c0_i32_0 = arith.constant 0 : i32
    %c0_i32_1 = arith.constant 0 : i32
    return %c0_i32, %c0_i32_0 : i32, i32
  }
  func.func @transform_3(%arg0: i32) -> (i32, i32) {
    %c0_i32 = arith.constant 0 : i32
    %c0_i32_0 = arith.constant 0 : i32
    %c0_i32_1 = arith.constant 0 : i32
    return %c0_i32, %c0_i32_0 : i32, i32
  }
  func.func @transform_4(%arg0: i32) -> (i32, i32) {
    %c0_i32 = arith.constant 0 : i32
    %c0_i32_0 = arith.constant 0 : i32
    %c0_i32_1 = arith.constant 0 : i32
    return %c0_i32, %c0_i32_0 : i32, i32
  }
  func.func @transform_5(%arg0: i32) -> (i32, i32) {
    %c0_i32 = arith.constant 0 : i32
    %c0_i32_0 = arith.constant 0 : i32
    return %arg0, %c0_i32 : i32, i32
  }
}

</mosaic_0001>

<bundles_post_ra>
// kernel: tpu_custom_call.1
= control target key start
LH: loop header
LB: loop body
LE: loop exit
PB: predicated region body
PF: predicated region fallthrough
CT: control target
= control target key end

     0   :  { %10 = vsyncpa [#allocation3], 0  ;;  %s950_s0 = inlined_call_operand.hbm [shape: f32[16,128], index: 0, kind: input, shape index: {}]   ;;  %s951_s1 = inlined_call_operand.hbm [shape: f32[128,128], index: 1, kind: input, shape index: {}]   ;;  %s952_s2 = inlined_call_operand.vmem [shape: f32[1,128], index: 2, kind: input, shape index: {}]   ;;  %s953_s3 = inlined_call_operand.hbm [shape: f32[128,128], index: 3, kind: input, shape index: {}]   ;;  %s954_s4 = inlined_call_operand.vmem [shape: f32[1,128], index: 4, kind: input, shape index: {}]   ;;  %s955_s5 = inlined_call_operand.hbm [shape: f32[16,128], index: 5, kind: output, shape index: {}]  }
   0x1   :  { %12 = vsyncpa [#allocation3 + $0x1], 0 }
   0x2   :  { %13 = vsyncpa [#allocation6], 0 }
   0x3   :  { %14 = vsyncpa [#allocation4], 0 }
   0x4   :  { %16 = vsyncpa [#allocation4 + $0x1], 0  ;;  %s792_s18 = smov 0   ;;  %s794_s19 = smov 0  }
   0x5   :  { %s796_s20 = smov 0   ;;  %s798_s21 = smov 0  }
   0x6 LB: > { %s174_s24 = sshll.u32 %s951_s1, 4  ;;  %s816_s25 = sadd.s32 4294967295, %s756_s21   ;;  %s756_s21 = sphi %s798_s21, %s966_s21   ;;  %s752_s20 = sphi %s796_s20, %s965_s20   ;;  %s748_s19 = sphi %s794_s19, %s964_s19   ;;  %s744_s18 = sphi %s792_s18, %s963_s18   ;;  %s175_s24 = int_to_ptr.hbm [resolvable:$true] %s174_s24 }
   0x7   : > { %p507_p0 = scmp.ge.s32.totalorder %s756_s21, 1  ;;  %p43_p1 = scmp.eq.s32.totalorder %s816_s25, 0 }
   0x8   : > { %p163_p2 = scmp.lt.s32.totalorder %s756_s21, 3  ;;  %s758_s27 = smov [#allocation5]  }
   0x9   : > { %s176_s28 = sshll.u32 %s758_s27, 4  ;;  %s191_s6 = sshll.u32 %s953_s3, 4  ;;  %s177_s28 = int_to_ptr.vmem [resolvable:$true] %s176_s28  ;;  %s192_s6 = int_to_ptr.hbm [resolvable:$true] %s191_s6 }
   0xa   : > { %p821_p3 = pnand %p507_p0, %p163_p2  ;;  %s759_s7 = smov [#allocation7]  }
   0xb   : > { %s193_s8 = sshll.u32 %s759_s7, 4  ;;  %s760_s9 = smov 128   ;;  %s194_s8 = int_to_ptr.vmem [resolvable:$true] %s193_s8 }
   0xc   : > { %p535_p4 = pneg %p821_p3  ;;  %s761_s10 = smov 8  }
   0xd   : > { %s506_s11 = sadd.s32 4294967294, %s756_s21   ;;  %s835_s12 = sadd.s32 1, %s756_s21  }
   0xe   : > { %p536_p6 = pnand %p535_p4, %p43_p1  ;;  %s26_s13 = ssub.s32 %s756_s21, %s835_s12 }
   0xf   : > { %s29_s14 = sadd.s32 1, %s752_s20  ;;  %p27_p7 = scmp.eq.s32.totalorder %s26_s13, 0 }
  0x10   : > { %538 = dma.hbm_to_vmem [thread:$0]  (!%p536_p6), %s175_s24, 2048, %s177_s28, [#allocation6], %s760_s9, %s760_s9, %s761_s10  }
  0x11   : > { %541 = dma.hbm_to_vmem [thread:$0]  (!%p536_p6), %s192_s6, 2048, %s194_s8, [#allocation6], %s760_s9, %s760_s9, %s761_s10  }
  0x12   : > { %p36_p8 = scmp.ne.s32.totalorder %s752_s20, %s748_s19  ;;  %p37_p9 = scmp.eq.s32.totalorder %s756_s21, 0 }
  0x13   : > { %p42_p10 = scmp.ne.s32.totalorder %s748_s19, %s744_s18  ;;  %p150_p13 = scmp.eq.s32.totalorder %s816_s25, 1 }
  0x14   : > { %s846_s15 = scalar_select %p27_p7, %s752_s20, %s29_s14  }
  0x15   : > { %p848_p11 = por %p37_p9, %p36_p8  ;;  %p854_p12 = por %p43_p1, %p42_p10 }
  0x16   : > { %p156_p0 = scmp.eq.s32.totalorder %s506_s11, 1  ;;  %p552_p2 = scmp.lt.s32.totalorder %s756_s21, 2 }
  0x17   : > { %s210_s22 = sand.u32 1, %s752_s20   ;;  %p861_p4 = por %p150_p13, %p36_p8 }
  0x18   : > { %p865_p6 = por %p156_p0, %p42_p10  ;;  %s511_s27 = sshll.u32 %s210_s22, 3 }
  0x19   : > { %s512_s28 = sshll.u32 %s756_s21, 3  ;;  %s214_s7 = scalar_lea.vmem [#allocation2], %s511_s27 }
  0x1a   : > { %s218_s6 = scalar_lea.hbm %s950_s0, %s512_s28  ;;  %s222_s8 = sshll.u32 %s214_s7, 4  ;;  %s223_s8 = int_to_ptr.vmem [resolvable:$true] %s222_s8 }
  0x1b   : > { %s220_s9 = sshll.u32 %s218_s6, 4  ;;  %p875_p7 = pnand %p552_p2, %p848_p11  ;;  %s221_s9 = int_to_ptr.hbm [resolvable:$true] %s220_s9 }
  0x1c   : > { %s211_s11 = scalar_lea.sflag [#allocation3], %s210_s22  ;;  %s656_s13 = sshra.s32 %s221_s9, 4  ;;  %s657_s13 = int_to_ptr.hbm [resolvable:$true] %s656_s13 }
  0x1d   : > { %s658_s14 = scalar_lea.hbm %s657_s13, 8  ;;  %p660_p9 = pneg %p875_p7 }
  0x1e   : > { %p659_p8 = scmp.ne.s32.totalorder %s657_s13, %s658_s14  ;;  %s663_s29 = scalar_lea.hbm %s950_s0, 16 }
  0x1f   : > { %p664_p11 = scmp.lt.s32.totalorder %s657_s13, %s950_s0  ;;  %p665_p0 = scmp.lt.s32.totalorder %s663_s29, %s658_s14 }
  0x20   : > { %p661_p10 = pnand %p660_p9, %p659_p8 }
  0x21   : > { %p666_p2 = por %p665_p0, %p664_p11 }
  0x22   : > { %p662_p13 = pneg %p661_p10 }
  0x24   : > { %p667_p5 = pnand %p666_p2, %p662_p13 }
  0x26   : > { %670 = shalt.err (!%p667_p5)
}
  0x27   : > { %545 = dma.hbm_to_vmem [thread:$0]  (!%p875_p7), %s221_s9, 128, %s223_s8, %s211_s11  }
  0x28   : > { %231 = sbr.rel (%p821_p3) target bundleno = 390 (0x186), region = 40  ;;  %s892_s22 = sand.u32 (!%p821_p3), 1, %s748_s19  }
  0x29   : > { %s514_s6 = sshll.u32 (!%p821_p3), %s892_s22, 3  ;;  %s234_s7 = scalar_lea.sflag (!%p821_p3), [#allocation3], %s892_s22 }
  0x2a   : > { %s898_s13 = scalar_lea.vmem (!%p821_p3), [#allocation2], %s514_s6 }
  0x2d   : > { %731 = dma.done.wait (%p854_p12), %s234_s7, 128  }
  0x2e   : > { %733 = vsyncadd (%p854_p12), %s234_s7, 4294967168 }
  0x2f   : > { %735 = dma.done.wait (%p43_p1), [#allocation6], 4096  }
  0x30   : > { %737 = vsyncadd (%p43_p1), [#allocation6], 4294963200  ;;  %v291_v0 = vld [vmem:[#allocation5 + $0x78] sm:$0xff]  ;;  %v290_v1 = vld [vmem:[#allocation5 + $0x70] sm:$0xff]  ;;  %s520_s8 = sshll.u32 %s816_s25, 3  ;;  %s274_s28 = scalar_lea.vmem [#allocation8], %s514_s6 }
  0x31   : > { %312 = vmatpush.msra.mxu0 %v291_v0  ;;  %v289_v2 = vld [vmem:[#allocation5 + $0x68] sm:$0xff]  ;;  %v288_v3 = vld [vmem:[#allocation5 + $0x60] sm:$0xff]  ;;  %v287_v4 = vld [vmem:[#allocation5 + $0x58] sm:$0xff]  ;;  %s412_s11 = scalar_lea.hbm %s955_s5, %s520_s8  ;;  %s414_s29 = sshll.u32 %s274_s28, 4  ;;  %s415_s29 = int_to_ptr.vmem [resolvable:$true] %s414_s29 }
  0x32   : > { %v286_v5 = vld [vmem:[#allocation5 + $0x50] sm:$0xff]  ;;  %v285_v6 = vld [vmem:[#allocation5 + $0x48] sm:$0xff]  ;;  %v284_v7 = vld [vmem:[#allocation5 + $0x40] sm:$0xff]  ;;  %s416_s30 = sshll.u32 %s412_s11, 4  ;;  %s402_s16 = scalar_lea.sflag [#allocation4], %s892_s22  ;;  %s417_s30 = int_to_ptr.hbm [resolvable:$true] %s416_s30 }
  0x33   : > { %313 = vmatpush.msra.mxu0 %v290_v1  ;;  %v283_v8 = vld [vmem:[#allocation5 + $0x38] sm:$0xff]  ;;  %v282_v9 = vld [vmem:[#allocation5 + $0x30] sm:$0xff]  ;;  %v281_v10 = vld [vmem:[#allocation5 + $0x28] sm:$0xff]  ;;  %s700_s25 = sshra.s32 %s417_s30, 4  ;;  %s706_s17 = scalar_lea.hbm %s955_s5, 16  ;;  %s701_s25 = int_to_ptr.hbm [resolvable:$true] %s700_s25 }
  0x34   : > { %v280_v11 = vld [vmem:[#allocation5 + $0x20] sm:$0xff]  ;;  %v279_v12 = vld [vmem:[#allocation5 + $0x18] sm:$0xff]  ;;  %v278_v13 = vld [vmem:[#allocation5 + $0x10] sm:$0xff]  ;;  %s702_s7 = scalar_lea.hbm %s701_s25, 8  ;;  %p707_p12 = scmp.lt.s32.totalorder %s701_s25, %s955_s5 }
  0x35   : > { %314 = vmatpush.msra.mxu0 %v289_v2  ;;  %v277_v14 = vld [vmem:[#allocation5 + $0x8] sm:$0xff]  ;;  %v276_v15 = vld [vmem:[#allocation5] sm:$0xff]  ;;  %v275_v16 = vld [vmem:[%s898_s13] sm:$0xff]  ;;  %p703_p1 = scmp.ne.s32.totalorder %s701_s25, %s702_s7  ;;  %p708_p7 = scmp.lt.s32.totalorder %s706_s17, %s702_s7 }
  0x36   : > { %v307_v17 = vld [vmem:[#allocation7 + $0x78] sm:$0xff]  ;;  %v306_v18 = vld [vmem:[#allocation7 + $0x70] sm:$0xff]  ;;  %v305_v19 = vld [vmem:[#allocation7 + $0x68] sm:$0xff] }
  0x37   : > { %315 = vmatpush.msra.mxu0 %v288_v3  ;;  %380 = vmatpush.msra.mxu1 %v307_v17  ;;  %v304_v20 = vld [vmem:[#allocation7 + $0x60] sm:$0xff]  ;;  %v592_v21 = vld [vmem:[%s952_s2] ss:$0 sm:$0xff]  ;;  %v303_v22 = vld [vmem:[#allocation7 + $0x58] sm:$0xff]  ;;  %p704_p3 = pnand %p703_p1, %p861_p4  ;;  %p709_p8 = por %p708_p7, %p707_p12 }
  0x38   : > { %v302_v23 = vld [vmem:[#allocation7 + $0x50] sm:$0xff]  ;;  %v301_v25 = vld [vmem:[#allocation7 + $0x48] sm:$0xff]  ;;  %v300_v27 = vld [vmem:[#allocation7 + $0x40] sm:$0xff] }
  0x39   : > { %316 = vmatpush.msra.mxu0 %v287_v4  ;;  %381 = vmatpush.msra.mxu1 %v306_v18  ;;  %v299_v29 = vld [vmem:[#allocation7 + $0x38] sm:$0xff]  ;;  %v298_v31 = vld [vmem:[#allocation7 + $0x30] sm:$0xff]  ;;  %v297_v33 = vld [vmem:[#allocation7 + $0x28] sm:$0xff]  ;;  %p705_p5 = pneg %p704_p3 }
  0x3a   : > { %v296_v36 = vld [vmem:[#allocation7 + $0x20] sm:$0xff]  ;;  %v295_v39 = vld [vmem:[#allocation7 + $0x18] sm:$0xff]  ;;  %v294_v42 = vld [vmem:[#allocation7 + $0x10] sm:$0xff] }
  0x3b   : > { %317 = vmatpush.msra.mxu0 %v286_v5  ;;  %382 = vmatpush.msra.mxu1 %v305_v19  ;;  %v293_v45 = vld [vmem:[#allocation7 + $0x8] sm:$0xff]  ;;  %v292_v47 = vld [vmem:[#allocation7] sm:$0xff]  ;;  %p710_p9 = pnand %p709_p8, %p705_p5 }
  0x3d   : > { %318 = vmatpush.msra.mxu0 %v285_v6  ;;  %383 = vmatpush.msra.mxu1 %v304_v20 }
  0x3f   : > { %319 = vmatpush.msra.mxu0 %v284_v7  ;;  %384 = vmatpush.msra.mxu1 %v303_v22 }
  0x41   : > { %320 = vmatpush.msra.mxu0 %v283_v8  ;;  %385 = vmatpush.msra.mxu1 %v302_v23 }
  0x43   : > { %321 = vmatpush.msra.mxu0 %v282_v9  ;;  %386 = vmatpush.msra.mxu1 %v301_v25 }
  0x45   : > { %322 = vmatpush.msra.mxu0 %v281_v10  ;;  %387 = vmatpush.msra.mxu1 %v300_v27 }
  0x47   : > { %323 = vmatpush.msra.mxu0 %v280_v11  ;;  %388 = vmatpush.msra.mxu1 %v299_v29  ;;  %v593_v11 = vld [vmem:[%s954_s4] ss:$0 sm:$0xff] }
  0x49   : > { %324 = vmatpush.msra.mxu0 %v279_v12  ;;  %389 = vmatpush.msra.mxu1 %v298_v31 }
  0x4b   : > { %325 = vmatpush.msra.mxu0 %v278_v13  ;;  %390 = vmatpush.msra.mxu1 %v297_v33 }
  0x4d   : > { %326 = vmatpush.msra.mxu0 %v277_v14  ;;  %391 = vmatpush.msra.mxu1 %v296_v36 }
  0x4f   : > { %327 = vmatpush.msra.mxu0 %v276_v15  ;;  %392 = vmatpush.msra.mxu1 %v295_v39 }
  0x50   : > { %328 = vmatmul.f32.vlgmr.msra.gmra.mxu0 %v275_v16 }
  0x51   : > { %393 = vmatpush.msra.mxu1 %v294_v42 }
  0x53   : > { %394 = vmatpush.msra.mxu1 %v293_v45 }
  0x55   : > { %395 = vmatpush.msra.mxu1 %v292_v47 }
  0xcd   : > { %v329_v24 = vpop.f32.mrf.mxu0 }
  0xce   : > { %v330_v26 = vadd.f32 %v592_v21, %v329_v24 }
  0xd0   : > { %v333_v28 = vmul.f32 0.70710677, %v330_v26  ;;  %v332_v8 = vmul.f32 0.5, %v330_v26 }
  0xd2   : > { %v334_v30 = vmul.f32 %v333_v28, %v333_v28 }
  0xd4   : > { %v335_v32 = vmin.f32 %v334_v30, 16.0 }
  0xd6   : > { %v336_v34 = vmul.f32 2.1237322e-06, %v335_v32  ;;  %v347_v35 = vmul.f32 3.8918573e-05, %v335_v32 }
  0xd8   : > { %v337_v37 = vadd.f32 0.00028619796, %v336_v34  ;;  %v348_v38 = vadd.f32 0.001143296, %v347_v35 }
  0xda   : > { %v338_v40 = vmul.f32 %v337_v37, %v335_v32  ;;  %v349_v41 = vmul.f32 %v348_v38, %v335_v32 }
  0xdc   : > { %v350_v43 = vadd.f32 0.014752088, %v349_v41  ;;  %v339_v44 = vadd.f32 0.0036580483, %v338_v40 }
  0xde   : > { %v351_v46 = vmul.f32 %v350_v43, %v335_v32  ;;  %v340_v49 = vmul.f32 %v339_v44, %v335_v32 }
  0xe0   : > { %v352_v48 = vadd.f32 0.112945676, %v351_v46  ;;  %v341_v52 = vadd.f32 0.05243302, %v340_v49 }
  0xe2   : > { %v353_v50 = vmul.f32 %v352_v48, %v335_v32  ;;  %v342_v55 = vmul.f32 %v341_v52, %v335_v32 }
  0xe4   : > { %v354_v51 = vadd.f32 0.4994258, %v353_v50  ;;  %v343_v56 = vadd.f32 0.18741608, %v342_v55 }
  0xe6   : > { %v355_v53 = vmul.f32 %v354_v51, %v335_v32  ;;  %v344_v58 = vmul.f32 %v343_v56, %v335_v32 }
  0xe8   : > { %v356_v54 = vadd.f32 1.0, %v355_v53  ;;  %v345_v62 = vadd.f32 1.1283791, %v344_v58 }
  0xea   : > { %594 = vrcp.f32 %v356_v54  ;;  %v368_v61 = vand.u32 2147483648, %v356_v54  ;;  %v366_v0 = vand.u32 2147483647, %v356_v54  ;;  %vm362_vm1 = vweird.f32 %v356_v54 }
  0xeb   : > { %v346_v3 = vmul.f32 %v345_v62, %v333_v28 }
  0xec   : > { %v369_v2 = vor.u32 1.1754944e-38, %v368_v61  ;;  %vm367_vm3 = vcmp.eq.f32.partialorder %v366_v0, 8.507059e+37 }
  0xf0   : > { %v595_v57 = vpop.eup %594 }
  0xf1   : > { %v358_v59 = vmul.f32 %v595_v57, %v356_v54  ;;  %vm363_vm0 = vweird.f32 %v595_v57 }
  0xf2   : > { %vm364_vm2 = vmor %vm362_vm1, %vm363_vm0 }
  0xf3   : > { %v359_v60 = vsub.f32 1.0, %v358_v59 }
  0xf5   : > { %v360_v63 = vmul.f32 %v595_v57, %v359_v60 }
  0xf7   : > { %v361_v1 = vadd.f32 %v595_v57, %v360_v63 }
  0xf9   : > { %v365_v4 = vsel %vm364_vm2, %v595_v57, %v361_v1 }
  0xfa   : > { %v370_v5 = vsel %vm367_vm3, %v369_v2, %v365_v4 }
  0xfb   : > { %v371_v6 = vmul.f32 %v370_v5, %v346_v3 }
  0xfd   : > { %v518_v7 = vclamps-f32 %v371_v6, 1.0 }
  0xff   : > { %v374_v9 = vadd.f32 1.0, %v518_v7 }
 0x101   : > { %v375_v10 = vmul.f32 %v374_v9, %v332_v8 }
 0x103   : > { %396 = vmatmul.f32.vlgmr.msra.gmra.mxu1 %v375_v10 }
 0x180   : > { %v397_v12 = vpop.f32.mrf.mxu1 }
 0x181   : > { %v398_v13 = vadd.f32 %v593_v11, %v397_v12 }
 0x183   : > { %400 = vst [vmem:[%s274_s28] sm:$0xff] %v398_v13 }
 0x184   : > { %713 = shalt.err (!%p710_p9)
}
 0x185   : > { %533 = dma.vmem_to_hbm [thread:$0]  (%p861_p4), %s415_s29, 128, %s417_s30, %s402_s16  }
 0x186 PF: > { %s428_s22 = sand.u32 1, %s744_s18   ;;  %p962_p10 = scmp.ge.s32.totalorder %s756_s21, 2 }
 0x187   : > { %s429_s9 = scalar_lea.sflag [#allocation4], %s428_s22 }
 0x188   : > { %p547_p13 = pnand %p962_p10, %p865_p6 }
 0x18a   : > { %p548_p11 = pneg %p547_p13 }
 0x18c   : > { %739 = dma.done.wait (%p548_p11), %s429_s9, 128  }
 0x18d   : > { %741 = vsyncadd (%p548_p11), %s429_s9, 4294967168  ;;  %p19_p0 = scmp.ge.s32.totalorder %s835_s12, 4   ;;  %s963_s18 = smov %s748_s19 }
 0x18e   : > { %s964_s19 = smov %s752_s20  ;;  %s965_s20 = smov %s846_s15 }
 0x18f   : > { %s966_s21 = smov %s835_s12  ;;  %21 = sbr.rel (!%p19_p0) target bundleno = 6 (0x6), region = 93 }
 0x194   :  { %435 = vsyncpa [#allocation3], 1 }
 0x195   :  { %437 = vsyncpa [#allocation3 + $0x1], 1 }
 0x196   :  { %438 = vsyncpa [#allocation6], 1 }
 0x197   :  { %439 = vsyncpa [#allocation4], 1 }
 0x198   :  { %441 = vsyncpa [#allocation4 + $0x1], 1 }

</bundles_post_ra>
